<compile_context>
chip_gen: v7x
topology: tpu7x:2x2x1
jax: 0.10.0
libtpu: 0.0.40
codegen_flags: <defaults>
</compile_context>

<pallas_src>
import jax
import jax.numpy as jnp
from jax.experimental import pallas as pl
from jax.experimental.pallas import tpu as pltpu

_LANES = 128


def _ccm_kernel(ccm_ref, x_ref, o_ref):
    # ccm_ref: SMEM (9,) float32   -- the 9 scalar mixing coefficients
    # x_ref:   VMEM (3, S, 128)    -- one sublane-dense spatial tile per channel
    # o_ref:   VMEM (3, S, 128)
    c0 = ccm_ref[0]
    c1 = ccm_ref[1]
    c2 = ccm_ref[2]
    c3 = ccm_ref[3]
    c4 = ccm_ref[4]
    c5 = ccm_ref[5]
    c6 = ccm_ref[6]
    c7 = ccm_ref[7]
    c8 = ccm_ref[8]
    r = x_ref[0]
    g = x_ref[1]
    b = x_ref[2]
    o_ref[0] = (c0 * r + c1 * g + c2 * b).astype(o_ref.dtype)
    o_ref[1] = (c3 * r + c4 * g + c5 * b).astype(o_ref.dtype)
    o_ref[2] = (c6 * r + c7 * g + c8 * b).astype(o_ref.dtype)


def _ccm_xla(rgb_data, c):
    """Small-input fast path / reference (PyTorch forward without the no-op /1.0)."""
    r, g, b = rgb_data[0], rgb_data[1], rgb_data[2]
    out = jnp.stack(
        [
            c[0] * r + c[1] * g + c[2] * b,
            c[3] * r + c[4] * g + c[5] * b,
            c[6] * r + c[7] * g + c[8] * b,
        ],
        axis=0,
    )
    return out.astype(rgb_data.dtype)


def ccm_forward(rgb_data, ccm_coeffs, *, block_rows=2048, use_pallas=None):
    """Apply the 3x3 CCM to channel-first RGB data.

    rgb_data:   (3, N) array, N = flattened spatial extent (any size).
    ccm_coeffs: (9,)   coefficients [c1..c9] in the PyTorch module's order.
    block_rows: rows of 128 lanes per grid step.  2048 (default) fits the
                default scoped-VMEM limit on v5e/v6e/v7x; 4096 is fine on
                v6e/v7x (32 MiB scoped default).
    use_pallas: None = auto (XLA fast path for small inputs), True/False force.
    """
    C, N = rgb_data.shape
    assert C == 3, "channel dim must be 3"

    coeffs = jnp.asarray(ccm_coeffs, dtype=jnp.float32)
    dt = rgb_data.dtype

    # dtype-aware sublane alignment (f32 -> 8, bf16 -> 16, int8 -> 32).
    itemsize = jnp.dtype(dt).itemsize
    sub = 32 // max(itemsize, 1)
    assert block_rows % sub == 0, (
        f"block_rows must be a multiple of {sub} for dtype {dt}")

    nb = pl.cdiv(N, _LANES)  # number of 128-lane rows needed per channel

    if use_pallas is None:
        # Below ~one block of pixels the launch/pipeline overhead dominates;
        # XLA fuses the 9-scalar expression trivially.
        use_pallas = nb >= 512
    if not use_pallas:
        return _ccm_xla(rgb_data, coeffs)

    # Only pad to a 128-lane multiple (a no-op whenever N % 128 == 0).  The
    # grid handles any row count via a ragged last block -- no block-multiple
    # padding and no output slice-copy.
    n_pad = nb * _LANES
    x = rgb_data
    if n_pad != N:
        x = jnp.pad(x, ((0, 0), (0, n_pad - N)))
    x = x.reshape(3, nb, _LANES)

    # Block size: as large as VMEM allows, but keep >= 2 grid steps so the
    # "parallel" axis shards across both TensorCores on v7x.
    if nb <= sub:
        s = nb  # full-dim block (legal even when < sublane multiple)
    else:
        half = -(-nb // 2)            # ceil(nb / 2)
        half = -(-half // sub) * sub  # round up to the sublane multiple
        s = min(block_rows, half)
    grid = (pl.cdiv(nb, s),)

    out = pl.pallas_call(
        _ccm_kernel,
        out_shape=jax.ShapeDtypeStruct((3, nb, _LANES), dt),
        grid=grid,
        in_specs=[
            pl.BlockSpec(memory_space=pltpu.SMEM),              # ccm coeffs
            pl.BlockSpec((3, s, _LANES), lambda i: (0, i, 0)),  # rgb tile
        ],
        out_specs=pl.BlockSpec((3, s, _LANES), lambda i: (0, i, 0)),
        compiler_params=pltpu.CompilerParams(
            dimension_semantics=("parallel",)  # megacore sharding on v7x
        ),
    )(coeffs, x)

    out = out.reshape(3, n_pad)
    if n_pad != N:
        out = out[:, :N]
    return out


if __name__ == "__main__":
    key = jax.random.PRNGKey(0)

    # Deterministic CCM coefficients (ccm_calc1 .. ccm_calc9).
    ccm = jnp.array(
        [1.5, -0.3, -0.2,
         -0.25, 1.4, -0.15,
         -0.1, -0.35, 1.45],
        dtype=jnp.float32,
    )

    k1, k2, k3 = jax.random.split(key, 3)

    # Case 1: 3-channel 16x16 image, flattened to (3, 256) -- forced through
    # the Pallas kernel (single full-dim block).
    H, W = 16, 16
    rgb = jax.random.uniform(k1, (3, H, W), dtype=jnp.float32)
    rgb_flat = rgb.reshape(3, H * W)
    out_flat = jax.block_until_ready(ccm_forward(rgb_flat, ccm, use_pallas=True))
    ref = _ccm_xla(rgb_flat, ccm)
    assert out_flat.shape == rgb_flat.shape and out_flat.dtype == rgb_flat.dtype
    assert jnp.allclose(out_flat, ref, atol=1e-6, rtol=1e-6)

    # Case 2: spatial extent not a multiple of 128 (tail handling), forced Pallas.
    N2 = 200
    rgb2 = jax.random.uniform(k2, (3, N2), dtype=jnp.float32)
    out2 = jax.block_until_ready(ccm_forward(rgb2, ccm, use_pallas=True))
    ref2 = _ccm_xla(rgb2, ccm)
    assert out2.shape == rgb2.shape and out2.dtype == rgb2.dtype
    assert jnp.allclose(out2, ref2, atol=1e-6, rtol=1e-6)

    # Case 3: multi-step grid with a ragged last block (nb=100, s=56, grid=2),
    # forced Pallas -- exercises the no-padding boundary-block path.
    N3 = 100 * _LANES
    rgb3 = jax.random.uniform(k3, (3, N3), dtype=jnp.float32)
    out3 = jax.block_until_ready(ccm_forward(rgb3, ccm, use_pallas=True))
    ref3 = _ccm_xla(rgb3, ccm)
    assert out3.shape == rgb3.shape and out3.dtype == rgb3.dtype
    assert jnp.allclose(out3, ref3, atol=1e-6, rtol=1e-6)

    # Case 4: auto dispatch (small input -> XLA fast path).
    out4 = jax.block_until_ready(ccm_forward(rgb_flat, ccm))
    assert jnp.allclose(out4, ref, atol=1e-6, rtol=1e-6)

    print("KERNEL_OK")
</pallas_src>

<mosaic_0001>
module attributes {stable_mosaic.version = 11 : i64} {
  func.func @_ccm_kernel(%arg0: i32, %arg1: memref<9xf32, #tpu.memory_space<smem>>, %arg2: memref<3x2x128xf32, #tpu.memory_space<vmem>>, %arg3: memref<3x2x128xf32, #tpu.memory_space<vmem>>) attributes {dimension_semantics = [#tpu.dimension_semantics<parallel>], iteration_bounds = array<i64: 1>, scalar_prefetch = 0 : i64, scratch_operands = 0 : i64, tpu.core_type = #tpu.core_type<tc>, window_params = [{transform_indices = @transform_0, window_bounds = array<i64: 9>}, {transform_indices = @transform_1, window_bounds = array<i64: 3, 2, 128>}, {transform_indices = @transform_2, window_bounds = array<i64: 3, 2, 128>}]} {
    %c0 = arith.constant 0 : index
    %0 = memref.load %arg1[%c0] : memref<9xf32, #tpu.memory_space<smem>>
    %c1 = arith.constant 1 : index
    %1 = memref.load %arg1[%c1] : memref<9xf32, #tpu.memory_space<smem>>
    %c2 = arith.constant 2 : index
    %2 = memref.load %arg1[%c2] : memref<9xf32, #tpu.memory_space<smem>>
    %c3 = arith.constant 3 : index
    %3 = memref.load %arg1[%c3] : memref<9xf32, #tpu.memory_space<smem>>
    %c4 = arith.constant 4 : index
    %4 = memref.load %arg1[%c4] : memref<9xf32, #tpu.memory_space<smem>>
    %c5 = arith.constant 5 : index
    %5 = memref.load %arg1[%c5] : memref<9xf32, #tpu.memory_space<smem>>
    %c6 = arith.constant 6 : index
    %6 = memref.load %arg1[%c6] : memref<9xf32, #tpu.memory_space<smem>>
    %c7 = arith.constant 7 : index
    %7 = memref.load %arg1[%c7] : memref<9xf32, #tpu.memory_space<smem>>
    %c8 = arith.constant 8 : index
    %8 = memref.load %arg1[%c8] : memref<9xf32, #tpu.memory_space<smem>>
    %c0_0 = arith.constant 0 : index
    %c0_1 = arith.constant 0 : index
    %c0_2 = arith.constant 0 : index
    %9 = vector.load %arg2[%c0_0, %c0_1, %c0_2] : memref<3x2x128xf32, #tpu.memory_space<vmem>>, vector<1x2x128xf32>
    %10 = vector.shape_cast %9 : vector<1x2x128xf32> to vector<2x128xf32>
    %c1_3 = arith.constant 1 : index
    %c0_4 = arith.constant 0 : index
    %c0_5 = arith.constant 0 : index
    %11 = vector.load %arg2[%c1_3, %c0_4, %c0_5] : memref<3x2x128xf32, #tpu.memory_space<vmem>>, vector<1x2x128xf32>
    %12 = vector.shape_cast %11 : vector<1x2x128xf32> to vector<2x128xf32>
    %c2_6 = arith.constant 2 : index
    %c0_7 = arith.constant 0 : index
    %c0_8 = arith.constant 0 : index
    %13 = vector.load %arg2[%c2_6, %c0_7, %c0_8] : memref<3x2x128xf32, #tpu.memory_space<vmem>>, vector<1x2x128xf32>
    %14 = vector.shape_cast %13 : vector<1x2x128xf32> to vector<2x128xf32>
    %15 = vector.broadcast %0 : f32 to vector<2x128xf32>
    %16 = arith.mulf %15, %10 : vector<2x128xf32>
    %17 = vector.broadcast %1 : f32 to vector<2x128xf32>
    %18 = arith.mulf %17, %12 : vector<2x128xf32>
    %19 = arith.addf %16, %18 : vector<2x128xf32>
    %20 = vector.broadcast %2 : f32 to vector<2x128xf32>
    %21 = arith.mulf %20, %14 : vector<2x128xf32>
    %22 = arith.addf %19, %21 : vector<2x128xf32>
    %c0_9 = arith.constant 0 : index
    %c0_10 = arith.constant 0 : index
    %c0_11 = arith.constant 0 : index
    %23 = vector.load %arg3[%c0_9, %c0_10, %c0_11] : memref<3x2x128xf32, #tpu.memory_space<vmem>>, vector<1x2x128xf32>
    %24 = vector.shape_cast %23 : vector<1x2x128xf32> to vector<2x128xf32>
    %25 = vector.shape_cast %22 : vector<2x128xf32> to vector<1x2x128xf32>
    tpu.vector_store %arg3[%c0_9, %c0_10, %c0_11], %25 {strides = array<i32>} : memref<3x2x128xf32, #tpu.memory_space<vmem>>, vector<1x2x128xf32>,
    %26 = vector.broadcast %3 : f32 to vector<2x128xf32>
    %27 = arith.mulf %26, %10 : vector<2x128xf32>
    %28 = vector.broadcast %4 : f32 to vector<2x128xf32>
    %29 = arith.mulf %28, %12 : vector<2x128xf32>
    %30 = arith.addf %27, %29 : vector<2x128xf32>
    %31 = vector.broadcast %5 : f32 to vector<2x128xf32>
    %32 = arith.mulf %31, %14 : vector<2x128xf32>
    %33 = arith.addf %30, %32 : vector<2x128xf32>
    %c1_12 = arith.constant 1 : index
    %c0_13 = arith.constant 0 : index
    %c0_14 = arith.constant 0 : index
    %34 = vector.load %arg3[%c1_12, %c0_13, %c0_14] : memref<3x2x128xf32, #tpu.memory_space<vmem>>, vector<1x2x128xf32>
    %35 = vector.shape_cast %34 : vector<1x2x128xf32> to vector<2x128xf32>
    %36 = vector.shape_cast %33 : vector<2x128xf32> to vector<1x2x128xf32>
    tpu.vector_store %arg3[%c1_12, %c0_13, %c0_14], %36 {strides = array<i32>} : memref<3x2x128xf32, #tpu.memory_space<vmem>>, vector<1x2x128xf32>,
    %37 = vector.broadcast %6 : f32 to vector<2x128xf32>
    %38 = arith.mulf %37, %10 : vector<2x128xf32>
    %39 = vector.broadcast %7 : f32 to vector<2x128xf32>
    %40 = arith.mulf %39, %12 : vector<2x128xf32>
    %41 = arith.addf %38, %40 : vector<2x128xf32>
    %42 = vector.broadcast %8 : f32 to vector<2x128xf32>
    %43 = arith.mulf %42, %14 : vector<2x128xf32>
    %44 = arith.addf %41, %43 : vector<2x128xf32>
    %c2_15 = arith.constant 2 : index
    %c0_16 = arith.constant 0 : index
    %c0_17 = arith.constant 0 : index
    %45 = vector.load %arg3[%c2_15, %c0_16, %c0_17] : memref<3x2x128xf32, #tpu.memory_space<vmem>>, vector<1x2x128xf32>
    %46 = vector.shape_cast %45 : vector<1x2x128xf32> to vector<2x128xf32>
    %47 = vector.shape_cast %44 : vector<2x128xf32> to vector<1x2x128xf32>
    tpu.vector_store %arg3[%c2_15, %c0_16, %c0_17], %47 {strides = array<i32>} : memref<3x2x128xf32, #tpu.memory_space<vmem>>, vector<1x2x128xf32>,
    return
  }
  func.func @transform_0(%arg0: i32) -> i32 {
    %c0_i32 = arith.constant 0 : i32
    %c0_i32_0 = arith.constant 0 : i32
    return %c0_i32 : i32
  }
  func.func @transform_1(%arg0: i32) -> (i32, i32, i32) {
    %c0_i32 = arith.constant 0 : i32
    %c0_i32_0 = arith.constant 0 : i32
    %c0_i32_1 = arith.constant 0 : i32
    return %c0_i32, %arg0, %c0_i32_0 : i32, i32, i32
  }
  func.func @transform_2(%arg0: i32) -> (i32, i32, i32) {
    %c0_i32 = arith.constant 0 : i32
    %c0_i32_0 = arith.constant 0 : i32
    %c0_i32_1 = arith.constant 0 : i32
    return %c0_i32, %arg0, %c0_i32_0 : i32, i32, i32
  }
}

</mosaic_0001>

<bundles_post_ra>
// kernel: tpu_custom_call.1
= control target key start
LH: loop header
LB: loop body
LE: loop exit
PB: predicated region body
PF: predicated region fallthrough
CT: control target
= control target key end

     0   :  { %7 = vsyncpa [#allocation5], 0  ;;  %s233_s0 = inlined_call_operand.hbm [shape: f32[9], index: 0, kind: input, shape index: {}]   ;;  %s234_s1 = inlined_call_operand.hbm [shape: f32[3,2,128], index: 1, kind: input, shape index: {}]   ;;  %s235_s2 = inlined_call_operand.hbm [shape: f32[3,2,128], index: 2, kind: output, shape index: {}]  }
   0x1   :  { %8 = vsyncpa [#allocation3], 0 }
   0x2   :  { %9 = vsyncpa [#allocation4], 0  ;;  %s111_s11 = scalar_lea.hbm %s233_s0, 16 }
   0x3   :  { %p112_p0 = scmp.ne.s32.totalorder %s233_s0, %s111_s11  ;;  %p115_p1 = scmp.lt.u32.totalorder %s111_s11, %s233_s0 }
   0x5   :  { %p117_p2 = pnand %p115_p1, %p112_p0 }
   0x7   :  { %120 = shalt.err (!%p117_p2)
}
   0x8   :  { %s171_s16 = smov [#allocation2]   ;;  %s172_s19 = smov [#allocation6]  }
   0x9   :  { %17 = dma.hbm_to_smem %s233_s0, 16, %s171_s16, [#allocation5]  }
   0xa   :  { %s23_s20 = sshll.u32 %s172_s19, 4  ;;  %s121_s23 = scalar_lea.hbm %s234_s1, 96  ;;  %s24_s20 = int_to_ptr.vmem [resolvable:$true] %s23_s20 }
   0xb   :  { %p122_p3 = scmp.ne.s32.totalorder %s234_s1, %s121_s23  ;;  %p125_p4 = scmp.lt.u32.totalorder %s121_s23, %s234_s1 }
   0xd   :  { %p127_p5 = pnand %p125_p4, %p122_p3 }
   0xf   :  { %130 = shalt.err (!%p127_p5)
}
  0x10   :  { %s131_s28 = scalar_lea.vmem %s24_s20, 96  ;;  %p136_p7 = scmp.lt.s32.totalorder %s24_s20, %s24_s20 }
  0x11   :  { %p132_p6 = scmp.ne.s32.totalorder %s24_s20, %s131_s28  ;;  %p137_p8 = scmp.lt.s32.totalorder %s131_s28, %s131_s28 }
  0x13   :  { %p138_p9 = por %p137_p8, %p136_p7 }
  0x15   :  { %p139_p10 = pnand %p138_p9, %p132_p6 }
  0x17   :  { %142 = shalt.err (!%p139_p10)
}
  0x18   :  { %s173_s0 = smov 32   ;;  %s174_s29 = smov 2  }
  0x19   :  { %29 = dma.hbm_to_vmem [thread:$0]  %s234_s1, 96, %s24_s20, [#allocation3], %s173_s0, %s173_s0, %s174_s29  }
  0x1a   :  { %165 = dma.done.wait [#allocation5], 16  }
  0x1b   :  { %166 = vsyncadd [#allocation5], 4294967280 }
  0x1c   :  { %167 = dma.done.wait [#allocation3], 96  }
  0x1d   :  { %168 = vsyncadd [#allocation3], 4294967200 }
  0x1e   :  { %36 = sfence }
  0x1f   :  { %s37_s4 = sld [smem:[#allocation2]]  ;;  %s98_s5 = sld [smem:[#allocation2 + $0x1]]  ;;  %v46_v0 = vld [vmem:[#allocation6] sm:$0x3]  ;;  %v48_v1 = vld [vmem:[#allocation6 + $0x2] sm:$0x3] }
  0x20   :  { %s99_s6 = sld [smem:[#allocation2 + $0x2]]  ;;  %s100_s7 = sld [smem:[#allocation2 + $0x3]]  ;;  %v50_v2 = vld [vmem:[#allocation6 + $0x4] sm:$0x3] }
  0x21   :  { %s101_s8 = sld [smem:[#allocation2 + $0x4]]  ;;  %s102_s9 = sld [smem:[#allocation2 + $0x5]] }
  0x22   :  { %s103_s10 = sld [smem:[#allocation2 + $0x6]]  ;;  %s104_s11 = sld [smem:[#allocation2 + $0x7]] }
  0x23   :  { %s105_s12 = sld [smem:[#allocation2 + $0x8]]  ;;  %s175_s1 = smov [#allocation7]  }
  0x24   :  { %s85_s13 = sshll.u32 %s175_s1, 4  ;;  %s86_s13 = int_to_ptr.vmem [resolvable:$true] %s85_s13 }
  0x25   :  { %v51_v3 = vstv %s37_s4  ;;  %v53_v4 = vstv %s98_s5  ;;  %s143_s14 = scalar_lea.vmem %s86_s13, 96  ;;  %p148_p12 = scmp.lt.s32.totalorder %s86_s13, %s86_s13 }
  0x26   :  { %v52_v5 = vmul.f32 %v51_v3, %v46_v0  ;;  %v54_v6 = vmul.f32 %v53_v4, %v48_v1  ;;  %v56_v7 = vstv %s99_s6  ;;  %v60_v9 = vstv %s100_s7  ;;  %p144_p11 = scmp.ne.s32.totalorder %s86_s13, %s143_s14  ;;  %p149_p13 = scmp.lt.s32.totalorder %s143_s14, %s143_s14 }
  0x27   :  { %v57_v8 = vmul.f32 %v56_v7, %v50_v2  ;;  %v62_v10 = vstv %s101_s8  ;;  %v61_v12 = vmul.f32 %v60_v9, %v46_v0  ;;  %v65_v14 = vstv %s102_s9 }
  0x28   :  { %v55_v11 = vadd.f32 %v54_v6, %v52_v5  ;;  %v63_v13 = vmul.f32 %v62_v10, %v48_v1  ;;  %v66_v15 = vmul.f32 %v65_v14, %v50_v2  ;;  %v70_v16 = vstv %s103_s10  ;;  %p150_p0 = por %p149_p13, %p148_p12 }
  0x29   :  { %v72_v17 = vstv %s104_s11  ;;  %v75_v18 = vstv %s105_s12  ;;  %v71_v21 = vmul.f32 %v70_v16, %v46_v0 }
  0x2a   :  { %v58_v19 = vadd.f32 %v57_v8, %v55_v11  ;;  %v64_v20 = vadd.f32 %v63_v13, %v61_v12  ;;  %v73_v22 = vmul.f32 %v72_v17, %v48_v1  ;;  %v76_v23 = vmul.f32 %v75_v18, %v50_v2  ;;  %p151_p1 = pnand %p150_p0, %p144_p11 }
  0x2c   :  { %59 = vst [vmem:[#allocation7] sm:$0x3] %v58_v19  ;;  %v67_v24 = vadd.f32 %v66_v15, %v64_v20  ;;  %v74_v25 = vadd.f32 %v73_v22, %v71_v21 }
  0x2e   :  { %69 = vst [vmem:[#allocation7 + $0x2] sm:$0x3] %v67_v24  ;;  %v77_v26 = vadd.f32 %v76_v23, %v74_v25 }
  0x30   :  { %79 = vst [vmem:[#allocation7 + $0x4] sm:$0x3] %v77_v26 }
  0x31   :  { %154 = shalt.err (!%p151_p1)
}
  0x32   :  { %s155_s17 = scalar_lea.hbm %s235_s2, 96 }
  0x33   :  { %p156_p2 = scmp.ne.s32.totalorder %s235_s2, %s155_s17  ;;  %p159_p3 = scmp.lt.u32.totalorder %s155_s17, %s235_s2 }
  0x35   :  { %p161_p4 = pnand %p159_p3, %p156_p2 }
  0x37   :  { %164 = shalt.err (!%p161_p4)
}
  0x38   :  { %91 = dma.vmem_to_hbm [thread:$0]  %s86_s13, 96, %s235_s2, [#allocation4], %s173_s0, %s173_s0, %s174_s29  }
  0x39   :  { %169 = dma.done.wait [#allocation4], 96  }
  0x3a   :  { %170 = vsyncadd [#allocation4], 4294967200 }
  0x3b   :  { %95 = vsyncpa [#allocation3], 1 }
  0x3c   :  { %96 = vsyncpa [#allocation4], 1 }
  0x3d   :  { %97 = vsyncpa [#allocation5], 1 }

</bundles_post_ra>
